<compile_context>
chip_gen: v7x
topology: tpu7x:2x2x1
jax: 0.10.0
libtpu: 0.0.40
codegen_flags: <defaults>
</compile_context>

<pallas_src>
import numpy as np
import jax
import jax.numpy as jnp
from jax.experimental import pallas as pl
from jax.experimental.pallas import tpu as pltpu


# ----------------------------------------------------------------------------
# kernel
# ----------------------------------------------------------------------------
def make_mha_kernel(n_heads, head_size, has_mask):
    width = n_heads * head_size
    scale = 1.0 / float(np.sqrt(head_size))

    def kernel(*refs):
        if has_mask:
            x_ref, mask_ref, wqkv_ref, bqkv_ref, wo_ref, bo_ref, o_ref = refs
        else:
            x_ref, wqkv_ref, bqkv_ref, wo_ref, bo_ref, o_ref = refs
            mask_ref = None

        x = x_ref[0]                                            # (S, W) f32
        S = x.shape[0]

        # ---- fused QKV projection: one bf16 MXU matmul, f32 accumulation ----
        qkv = jnp.dot(x.astype(jnp.bfloat16), wqkv_ref[...],
                      preferred_element_type=jnp.float32) + bqkv_ref[...]   # (S, 3W)

        # ---- mask -> additive bias, computed ONCE (hoisted out of head loop) ----
        if mask_ref is not None:
            # key-padding (or full) mask; 0 => disallowed.  Broadcasts over query rows.
            mask_bias = jnp.where(mask_ref[0] == 0.0, -1e30, 0.0)           # (Mq, S)
        else:
            mask_bias = None

        # ---- per-head attention, accumulated straight through W_o (no concat) ----
        acc = jnp.zeros((S, width), jnp.float32)
        for hd in range(n_heads):
            lo = hd * head_size
            q = qkv[:, lo:lo + head_size]
            k = qkv[:, width + lo:width + lo + head_size]
            v = qkv[:, 2 * width + lo:2 * width + lo + head_size]

            att = jax.lax.dot_general(
                q.astype(jnp.bfloat16), k.astype(jnp.bfloat16),
                (((1,), (1,)), ((), ())),
                preferred_element_type=jnp.float32) * scale                 # (S, S)
            if mask_bias is not None:
                att = att + mask_bias

            # softmax (f32), denominator via EUP reciprocal instead of a VPU divide
            att = att - jnp.max(att, axis=-1, keepdims=True)
            p = jnp.exp(att)
            denom = jnp.sum(p, axis=-1, keepdims=True)
            p = p * pl.reciprocal(denom, approx=True)

            head_out = jnp.dot(p.astype(jnp.bfloat16), v.astype(jnp.bfloat16),
                               preferred_element_type=jnp.float32)          # (S, D)

            # accumulate through the matching rows of W_o (bf16 weight slice)
            acc = acc + jnp.dot(head_out.astype(jnp.bfloat16),
                                wo_ref[lo:lo + head_size, :],
                                preferred_element_type=jnp.float32)         # (S, W)

        out = acc + bo_ref[...]                                             # single bias add
        o_ref[0] = out.astype(o_ref.dtype)

    return kernel


# ----------------------------------------------------------------------------
# wrapper
# ----------------------------------------------------------------------------
def multi_head_attention_pallas(x, mask, params):
    B, S, W = x.shape
    has_mask = mask is not None
    kernel = make_mha_kernel(params["n_heads"], params["head_size"], has_mask)

    inputs = [x]
    in_specs = [pl.BlockSpec((1, S, W), lambda b: (b, 0, 0))]
    if has_mask:
        # mask: (B, 1, S) key-padding vector (or (B, S, S) dense), 0 => masked out
        inputs.append(mask)
        in_specs.append(pl.BlockSpec((1,) + mask.shape[1:], lambda b: (b, 0, 0)))
    for name in ("w_qkv", "b_qkv", "w_o", "b_o"):
        w = params[name]
        inputs.append(w)
        in_specs.append(pl.BlockSpec(w.shape, lambda b, _nd=w.ndim: (0,) * _nd))

    return pl.pallas_call(
        kernel,
        out_shape=jax.ShapeDtypeStruct((B, S, W), jnp.float32),
        grid=(B,),
        in_specs=in_specs,
        out_specs=pl.BlockSpec((1, S, W), lambda b: (b, 0, 0)),
        compiler_params=pltpu.CompilerParams(
            dimension_semantics=("parallel",),
            vmem_limit_bytes=32 * 1024 * 1024,
        ),
    )(*inputs)


# ----------------------------------------------------------------------------
# parameters (QKV fused ONCE at init, weights stored in bf16)
# ----------------------------------------------------------------------------
def init_mha_params(key, width, n_heads):
    head_size = width // n_heads
    ks = jax.random.split(key, 8)

    def w_init(k, fan_in, fan_out):
        return jax.random.normal(k, (fan_in, fan_out), jnp.float32) / np.sqrt(fan_in)

    def b_init(k, fan_out):
        return jax.random.normal(k, (1, fan_out), jnp.float32) * 0.02

    # per-head q/k/v linears of shape (W, D) laid out as columns [hd*D:(hd+1)*D]
    w_q, w_k, w_v = w_init(ks[0], width, width), w_init(ks[1], width, width), w_init(ks[2], width, width)
    b_q, b_k, b_v = b_init(ks[3], width), b_init(ks[4], width), b_init(ks[5], width)
    w_o, b_o = w_init(ks[6], width, width), b_init(ks[7], width)

    w_qkv = jnp.concatenate([w_q, w_k, w_v], axis=1)            # (W, 3W)
    b_qkv = jnp.concatenate([b_q, b_k, b_v], axis=1)            # (1, 3W)

    return dict(
        n_heads=n_heads, head_size=head_size,
        w_qkv=w_qkv.astype(jnp.bfloat16), b_qkv=b_qkv,          # bf16 weights, f32 biases
        w_o=w_o.astype(jnp.bfloat16), b_o=b_o,
    )


# ----------------------------------------------------------------------------
# pure-JAX f32 reference (mirrors the PyTorch module exactly)
# ----------------------------------------------------------------------------
def mha_reference(x, mask, params):
    n_heads, head_size = params["n_heads"], params["head_size"]
    width = n_heads * head_size
    w_qkv = params["w_qkv"].astype(jnp.float32)
    w_o = params["w_o"].astype(jnp.float32)
    qkv = jnp.einsum("bsw,wd->bsd", x, w_qkv) + params["b_qkv"]
    outs = []
    for hd in range(n_heads):
        lo = hd * head_size
        q = qkv[..., lo:lo + head_size]
        k = qkv[..., width + lo:width + lo + head_size]
        v = qkv[..., 2 * width + lo:2 * width + lo + head_size]
        att = jnp.einsum("bqd,bkd->bqk", q, k) / np.sqrt(head_size)
        if mask is not None:
            att = jnp.where(mask == 0.0, -jnp.inf, att)
        att = jax.nn.softmax(att, axis=-1)
        outs.append(jnp.einsum("bqk,bkd->bqd", att, v))
    out = jnp.concatenate(outs, axis=-1)
    return jnp.einsum("bsw,wd->bsd", out, w_o) + params["b_o"]


# ----------------------------------------------------------------------------
if __name__ == "__main__":
    B, S, W, n_heads = 2, 8, 32, 2
    # NOTE: toy shapes (W=32, head_size=16) are lane-sparse; at real model sizes
    # pick W / head_size as multiples of 128 for lane-dense stores & full MXU depth.

    root = jax.random.PRNGKey(0)
    k_param, k_x = jax.random.split(root)
    params = init_mha_params(k_param, W, n_heads)
    x = jax.random.normal(k_x, (B, S, W), jnp.float32)

    # key-padding mask: sequence 0 fully valid, sequence 1 has 5 valid tokens
    lengths = np.array([S, 5], dtype=np.int32)
    mask_np = np.zeros((B, 1, S), dtype=np.float32)
    for b in range(B):
        mask_np[b, 0, : lengths[b]] = 1.0
    mask = jnp.asarray(mask_np)

    # masked forward
    out = jax.block_until_ready(multi_head_attention_pallas(x, mask, params))
    ref = mha_reference(x, mask, params)
    assert out.shape == (B, S, W)
    assert np.all(np.isfinite(np.asarray(out)))
    assert np.allclose(np.asarray(out), np.asarray(ref), atol=5e-2, rtol=5e-2)

    # unmasked forward (module supports mask=None)
    out_nm = jax.block_until_ready(multi_head_attention_pallas(x, None, params))
    ref_nm = mha_reference(x, None, params)
    assert np.allclose(np.asarray(out_nm), np.asarray(ref_nm), atol=5e-2, rtol=5e-2)

    print("KERNEL_OK")
</pallas_src>

<mosaic_0001>
module attributes {stable_mosaic.version = 11 : i64} {
  func.func @kernel(%arg0: i32, %arg1: memref<1x8x32xf32, #tpu.memory_space<vmem>>, %arg2: memref<1x1x8xf32, #tpu.memory_space<vmem>>, %arg3: memref<32x96xbf16, #tpu.memory_space<vmem>>, %arg4: memref<1x96xf32, #tpu.memory_space<vmem>>, %arg5: memref<32x32xbf16, #tpu.memory_space<vmem>>, %arg6: memref<1x32xf32, #tpu.memory_space<vmem>>, %arg7: memref<1x8x32xf32, #tpu.memory_space<vmem>>) attributes {dimension_semantics = [#tpu.dimension_semantics<parallel>], iteration_bounds = array<i64: 2>, scalar_prefetch = 0 : i64, scratch_operands = 0 : i64, tpu.core_type = #tpu.core_type<tc>, window_params = [{transform_indices = @transform_0, window_bounds = array<i64: 1, 8, 32>}, {transform_indices = @transform_1, window_bounds = array<i64: 1, 1, 8>}, {pipeline_mode = #tpu.pipeline_mode<synchronous>, transform_indices = @transform_2, window_bounds = array<i64: 32, 96>}, {pipeline_mode = #tpu.pipeline_mode<synchronous>, transform_indices = @transform_3, window_bounds = array<i64: 1, 96>}, {pipeline_mode = #tpu.pipeline_mode<synchronous>, transform_indices = @transform_4, window_bounds = array<i64: 32, 32>}, {pipeline_mode = #tpu.pipeline_mode<synchronous>, transform_indices = @transform_5, window_bounds = array<i64: 1, 32>}, {transform_indices = @transform_6, window_bounds = array<i64: 1, 8, 32>}]} {
    %c0 = arith.constant 0 : index
    %c0_0 = arith.constant 0 : index
    %c0_1 = arith.constant 0 : index
    %0 = vector.load %arg1[%c0, %c0_0, %c0_1] : memref<1x8x32xf32, #tpu.memory_space<vmem>>, vector<1x8x32xf32>
    %1 = vector.shape_cast %0 : vector<1x8x32xf32> to vector<8x32xf32>
    %2 = arith.truncf %1 : vector<8x32xf32> to vector<8x32xbf16>
    %c0_2 = arith.constant 0 : index
    %c0_3 = arith.constant 0 : index
    %3 = vector.load %arg3[%c0_2, %c0_3] : memref<32x96xbf16, #tpu.memory_space<vmem>>, vector<32x96xbf16>
    %cst = arith.constant dense<0.000000e+00> : vector<8x96xf32>
    %4 = tpu.matmul %2, %3, %cst {dimension_numbers = #tpu.dot_dimension_numbers<[1], [0], [0], [1], [0, 0, 1, 1], [], []>} : vector<8x32xbf16>, vector<32x96xbf16>, vector<8x96xf32> -> vector<8x96xf32>
    %c0_4 = arith.constant 0 : index
    %c0_5 = arith.constant 0 : index
    %5 = vector.load %arg4[%c0_4, %c0_5] : memref<1x96xf32, #tpu.memory_space<vmem>>, vector<1x96xf32>
    %6 = vector.broadcast %5 : vector<1x96xf32> to vector<8x96xf32>
    %7 = arith.addf %4, %6 : vector<8x96xf32>
    %c0_6 = arith.constant 0 : index
    %c0_7 = arith.constant 0 : index
    %c0_8 = arith.constant 0 : index
    %8 = vector.load %arg2[%c0_6, %c0_7, %c0_8] : memref<1x1x8xf32, #tpu.memory_space<vmem>>, vector<1x1x8xf32>
    %9 = vector.shape_cast %8 : vector<1x1x8xf32> to vector<1x8xf32>
    %cst_9 = arith.constant 0.000000e+00 : f32
    %10 = vector.broadcast %cst_9 : f32 to vector<1x8xf32>
    %11 = arith.cmpf oeq, %9, %10 : vector<1x8xf32>
    %cst_10 = arith.constant -1.000000e+30 : f32
    %cst_11 = arith.constant 0.000000e+00 : f32
    %12 = vector.broadcast %cst_10 : f32 to vector<1x8xf32>
    %13 = vector.broadcast %cst_11 : f32 to vector<1x8xf32>
    %14 = arith.select %11, %12, %13 : vector<1x8xi1>, vector<1x8xf32>
    %cst_12 = arith.constant 0.000000e+00 : f32
    %15 = vector.broadcast %cst_12 : f32 to vector<8x32xf32>
    %16 = vector.extract_strided_slice %7 {offsets = [0, 0], sizes = [8, 16], strides = [1, 1]} : vector<8x96xf32> to vector<8x16xf32>
    %17 = vector.extract_strided_slice %7 {offsets = [0, 32], sizes = [8, 16], strides = [1, 1]} : vector<8x96xf32> to vector<8x16xf32>
    %18 = vector.extract_strided_slice %7 {offsets = [0, 64], sizes = [8, 16], strides = [1, 1]} : vector<8x96xf32> to vector<8x16xf32>
    %19 = arith.truncf %16 : vector<8x16xf32> to vector<8x16xbf16>
    %20 = arith.truncf %17 : vector<8x16xf32> to vector<8x16xbf16>
    %cst_13 = arith.constant dense<0.000000e+00> : vector<8x8xf32>
    %21 = tpu.matmul %19, %20, %cst_13 {dimension_numbers = #tpu.dot_dimension_numbers<[1], [1], [0], [0], [0, 0, 1, 0], [], []>} : vector<8x16xbf16>, vector<8x16xbf16>, vector<8x8xf32> -> vector<8x8xf32>
    %cst_14 = arith.constant 2.500000e-01 : f32
    %22 = vector.broadcast %cst_14 : f32 to vector<8x8xf32>
    %23 = arith.mulf %21, %22 : vector<8x8xf32>
    %24 = vector.broadcast %14 : vector<1x8xf32> to vector<8x8xf32>
    %25 = arith.addf %23, %24 : vector<8x8xf32>
    %cst_15 = arith.constant dense<0xFF800000> : vector<8xf32>
    %26 = vector.multi_reduction <maximumf>, %25, %cst_15 [1] : vector<8x8xf32> to vector<8xf32>
    %27 = vector.shape_cast %26 : vector<8xf32> to vector<8x1xf32>
    %28 = vector.broadcast %27 : vector<8x1xf32> to vector<8x8xf32>
    %29 = arith.subf %25, %28 : vector<8x8xf32>
    %30 = math.exp %29 : vector<8x8xf32>
    %cst_16 = arith.constant dense<0.000000e+00> : vector<8xf32>
    %31 = vector.multi_reduction <add>, %30, %cst_16 [1] : vector<8x8xf32> to vector<8xf32>
    %32 = vector.shape_cast %31 : vector<8xf32> to vector<8x1xf32>
    %33 = tpu.reciprocal %32 {approx = true} : vector<8x1xf32> -> vector<8x1xf32>
    %34 = vector.broadcast %33 : vector<8x1xf32> to vector<8x8xf32>
    %35 = arith.mulf %30, %34 : vector<8x8xf32>
    %36 = arith.truncf %35 : vector<8x8xf32> to vector<8x8xbf16>
    %37 = arith.truncf %18 : vector<8x16xf32> to vector<8x16xbf16>
    %cst_17 = arith.constant dense<0.000000e+00> : vector<8x16xf32>
    %38 = tpu.matmul %36, %37, %cst_17 {dimension_numbers = #tpu.dot_dimension_numbers<[1], [0], [0], [1], [0, 0, 1, 1], [], []>} : vector<8x8xbf16>, vector<8x16xbf16>, vector<8x16xf32> -> vector<8x16xf32>
    %39 = arith.truncf %38 : vector<8x16xf32> to vector<8x16xbf16>
    %c0_18 = arith.constant 0 : index
    %c0_19 = arith.constant 0 : index
    %40 = vector.load %arg5[%c0_18, %c0_19] : memref<32x32xbf16, #tpu.memory_space<vmem>>, vector<16x32xbf16>
    %cst_20 = arith.constant dense<0.000000e+00> : vector<8x32xf32>
    %41 = tpu.matmul %39, %40, %cst_20 {dimension_numbers = #tpu.dot_dimension_numbers<[1], [0], [0], [1], [0, 0, 1, 1], [], []>} : vector<8x16xbf16>, vector<16x32xbf16>, vector<8x32xf32> -> vector<8x32xf32>
    %42 = arith.addf %15, %41 : vector<8x32xf32>
    %43 = vector.extract_strided_slice %7 {offsets = [0, 16], sizes = [8, 16], strides = [1, 1]} : vector<8x96xf32> to vector<8x16xf32>
    %44 = vector.extract_strided_slice %7 {offsets = [0, 48], sizes = [8, 16], strides = [1, 1]} : vector<8x96xf32> to vector<8x16xf32>
    %45 = vector.extract_strided_slice %7 {offsets = [0, 80], sizes = [8, 16], strides = [1, 1]} : vector<8x96xf32> to vector<8x16xf32>
    %46 = arith.truncf %43 : vector<8x16xf32> to vector<8x16xbf16>
    %47 = arith.truncf %44 : vector<8x16xf32> to vector<8x16xbf16>
    %cst_21 = arith.constant dense<0.000000e+00> : vector<8x8xf32>
    %48 = tpu.matmul %46, %47, %cst_21 {dimension_numbers = #tpu.dot_dimension_numbers<[1], [1], [0], [0], [0, 0, 1, 0], [], []>} : vector<8x16xbf16>, vector<8x16xbf16>, vector<8x8xf32> -> vector<8x8xf32>
    %cst_22 = arith.constant 2.500000e-01 : f32
    %49 = vector.broadcast %cst_22 : f32 to vector<8x8xf32>
    %50 = arith.mulf %48, %49 : vector<8x8xf32>
    %51 = vector.broadcast %14 : vector<1x8xf32> to vector<8x8xf32>
    %52 = arith.addf %50, %51 : vector<8x8xf32>
    %cst_23 = arith.constant dense<0xFF800000> : vector<8xf32>
    %53 = vector.multi_reduction <maximumf>, %52, %cst_23 [1] : vector<8x8xf32> to vector<8xf32>
    %54 = vector.shape_cast %53 : vector<8xf32> to vector<8x1xf32>
    %55 = vector.broadcast %54 : vector<8x1xf32> to vector<8x8xf32>
    %56 = arith.subf %52, %55 : vector<8x8xf32>
    %57 = math.exp %56 : vector<8x8xf32>
    %cst_24 = arith.constant dense<0.000000e+00> : vector<8xf32>
    %58 = vector.multi_reduction <add>, %57, %cst_24 [1] : vector<8x8xf32> to vector<8xf32>
    %59 = vector.shape_cast %58 : vector<8xf32> to vector<8x1xf32>
    %60 = tpu.reciprocal %59 {approx = true} : vector<8x1xf32> -> vector<8x1xf32>
    %61 = vector.broadcast %60 : vector<8x1xf32> to vector<8x8xf32>
    %62 = arith.mulf %57, %61 : vector<8x8xf32>
    %63 = arith.truncf %62 : vector<8x8xf32> to vector<8x8xbf16>
    %64 = arith.truncf %45 : vector<8x16xf32> to vector<8x16xbf16>
    %cst_25 = arith.constant dense<0.000000e+00> : vector<8x16xf32>
    %65 = tpu.matmul %63, %64, %cst_25 {dimension_numbers = #tpu.dot_dimension_numbers<[1], [0], [0], [1], [0, 0, 1, 1], [], []>} : vector<8x8xbf16>, vector<8x16xbf16>, vector<8x16xf32> -> vector<8x16xf32>
    %66 = arith.truncf %65 : vector<8x16xf32> to vector<8x16xbf16>
    %c16 = arith.constant 16 : index
    %c0_26 = arith.constant 0 : index
    %67 = vector.load %arg5[%c16, %c0_26] : memref<32x32xbf16, #tpu.memory_space<vmem>>, vector<16x32xbf16>
    %cst_27 = arith.constant dense<0.000000e+00> : vector<8x32xf32>
    %68 = tpu.matmul %66, %67, %cst_27 {dimension_numbers = #tpu.dot_dimension_numbers<[1], [0], [0], [1], [0, 0, 1, 1], [], []>} : vector<8x16xbf16>, vector<16x32xbf16>, vector<8x32xf32> -> vector<8x32xf32>
    %69 = arith.addf %42, %68 : vector<8x32xf32>
    %c0_28 = arith.constant 0 : index
    %c0_29 = arith.constant 0 : index
    %70 = vector.load %arg6[%c0_28, %c0_29] : memref<1x32xf32, #tpu.memory_space<vmem>>, vector<1x32xf32>
    %71 = vector.broadcast %70 : vector<1x32xf32> to vector<8x32xf32>
    %72 = arith.addf %69, %71 : vector<8x32xf32>
    %c0_30 = arith.constant 0 : index
    %c0_31 = arith.constant 0 : index
    %c0_32 = arith.constant 0 : index
    %73 = vector.load %arg7[%c0_30, %c0_31, %c0_32] : memref<1x8x32xf32, #tpu.memory_space<vmem>>, vector<1x8x32xf32>
    %74 = vector.shape_cast %73 : vector<1x8x32xf32> to vector<8x32xf32>
    %75 = vector.shape_cast %72 : vector<8x32xf32> to vector<1x8x32xf32>
    tpu.vector_store %arg7[%c0_30, %c0_31, %c0_32], %75 {strides = array<i32>} : memref<1x8x32xf32, #tpu.memory_space<vmem>>, vector<1x8x32xf32>,
    return
  }
  func.func @transform_0(%arg0: i32) -> (i32, i32, i32) {
    %c0_i32 = arith.constant 0 : i32
    %c0_i32_0 = arith.constant 0 : i32
    %c0_i32_1 = arith.constant 0 : i32
    return %arg0, %c0_i32, %c0_i32_0 : i32, i32, i32
  }
  func.func @transform_1(%arg0: i32) -> (i32, i32, i32) {
    %c0_i32 = arith.constant 0 : i32
    %c0_i32_0 = arith.constant 0 : i32
    %c0_i32_1 = arith.constant 0 : i32
    return %arg0, %c0_i32, %c0_i32_0 : i32, i32, i32
  }
  func.func @transform_2(%arg0: i32) -> (i32, i32) {
    %c0_i32 = arith.constant 0 : i32
    %c0_i32_0 = arith.constant 0 : i32
    %c0_i32_1 = arith.constant 0 : i32
    return %c0_i32, %c0_i32_0 : i32, i32
  }
  func.func @transform_3(%arg0: i32) -> (i32, i32) {
    %c0_i32 = arith.constant 0 : i32
    %c0_i32_0 = arith.constant 0 : i32
    %c0_i32_1 = arith.constant 0 : i32
    return %c0_i32, %c0_i32_0 : i32, i32
  }
  func.func @transform_4(%arg0: i32) -> (i32, i32) {
    %c0_i32 = arith.constant 0 : i32
    %c0_i32_0 = arith.constant 0 : i32
    %c0_i32_1 = arith.constant 0 : i32
    return %c0_i32, %c0_i32_0 : i32, i32
  }
  func.func @transform_5(%arg0: i32) -> (i32, i32) {
    %c0_i32 = arith.constant 0 : i32
    %c0_i32_0 = arith.constant 0 : i32
    %c0_i32_1 = arith.constant 0 : i32
    return %c0_i32, %c0_i32_0 : i32, i32
  }
  func.func @transform_6(%arg0: i32) -> (i32, i32, i32) {
    %c0_i32 = arith.constant 0 : i32
    %c0_i32_0 = arith.constant 0 : i32
    %c0_i32_1 = arith.constant 0 : i32
    return %arg0, %c0_i32, %c0_i32_0 : i32, i32, i32
  }
}

</mosaic_0001>

<bundles_post_ra>
// kernel: tpu_custom_call.1
= control target key start
LH: loop header
LB: loop body
LE: loop exit
PB: predicated region body
PF: predicated region fallthrough
CT: control target
= control target key end

     0   :  { %11 = vsyncpa [#allocation3], 0  ;;  %s1512_s0 = inlined_call_operand.hbm [shape: f32[2,8,32], index: 0, kind: input, shape index: {}]   ;;  %s1513_s1 = inlined_call_operand.vmem [shape: f32[2,1,8], index: 1, kind: input, shape index: {}]   ;;  %s1514_s2 = inlined_call_operand.hbm [shape: bf16[32,96], index: 2, kind: input, shape index: {}]   ;;  %s1515_s3 = inlined_call_operand.vmem [shape: f32[1,96], index: 3, kind: input, shape index: {}]   ;;  %s1516_s4 = inlined_call_operand.hbm [shape: bf16[32,32], index: 4, kind: input, shape index: {}]   ;;  %s1517_s5 = inlined_call_operand.vmem [shape: f32[1,32], index: 5, kind: input, shape index: {}]   ;;  %s1518_s6 = inlined_call_operand.hbm [shape: f32[2,8,32], index: 6, kind: output, shape index: {}]  }
   0x1   :  { %13 = vsyncpa [#allocation3 + $0x1], 0 }
   0x2   :  { %14 = vsyncpa [#allocation6], 0 }
   0x3   :  { %15 = vsyncpa [#allocation4], 0 }
   0x4   :  { %17 = vsyncpa [#allocation4 + $0x1], 0  ;;  %s1223_s21 = smov 0   ;;  %s1225_s22 = smov 0  }
   0x5   :  { %s1227_s23 = smov 0   ;;  %s1229_s24 = smov 0  }
   0x6 LB: > { %s1244_s25 = sadd.s32 4294967295, %s1173_s24   ;;  %s841_s26 = sadd.s32 4294967294, %s1173_s24   ;;  %s1173_s24 = sphi %s1229_s24, %s1538_s24   ;;  %s1169_s23 = sphi %s1227_s23, %s1537_s23   ;;  %s1165_s22 = sphi %s1225_s22, %s1536_s22   ;;  %s1161_s21 = sphi %s1223_s21, %s1535_s21  }
   0x7   : > { %p43_p0 = scmp.ne.s32.totalorder %s1165_s22, %s1161_s21  ;;  %p1519_p1 = scmp.eq.s32.totalorder %s1244_s25, 0 }
   0x8   : > { %p183_p3 = scmp.eq.s32.totalorder %s841_s26, 1  ;;  %p842_p5 = scmp.ge.s32.totalorder %s1173_s24, 1 }
   0x9   : > { %p1253_p4 = por %p1519_p1, %p43_p0  ;;  %p190_p7 = scmp.lt.s32.totalorder %s1173_s24, 3 }
   0xa   : > { %p1258_p6 = por %p183_p3, %p43_p0  ;;  %s1175_s30 = smov [#allocation5]  }
   0xb   : > { %s1522_s27 = scalar_select %p1253_p4, 1, 0 }
   0xc   : > { %s1523_s28 = scalar_select %p1258_p6, 1, 0 }
   0xd   : > { %p1263_p8 = pnand %p842_p5, %p190_p7  ;;  %s202_s7 = sshll.u32 %s1175_s30, 4  ;;  %s1267_s7 = int_to_ptr.vmem [resolvable:$true] %s202_s7 }
   0xe   : > { %s1176_s9 = smov [#allocation7]   ;;  %s1017_s13 = scalar_lea.hbm %s1514_s2, 256 }
   0xf   : > { %p941_p9 = pneg %p1263_p8  ;;  %s218_s10 = sshll.u32 %s1176_s9, 4  ;;  %s1278_s10 = int_to_ptr.vmem [resolvable:$true] %s218_s10 }
  0x10   : > { %p1018_p12 = scmp.ne.s32.totalorder %s1514_s2, %s1017_s13  ;;  %p1024_p5 = scmp.lt.u32.totalorder %s1017_s13, %s1514_s2 }
  0x11   : > { %p1274_p11 = pnand %p941_p9, %p1519_p1 }
  0x13   : > { %p1019_p13 = pneg %p1274_p11 }
  0x15   : > { %p1020_p0 = pnand %p1019_p13, %p1018_p12 }
  0x17   : > { %p1021_p3 = pneg %p1020_p0 }
  0x19   : > { %p1026_p7 = pnand %p1024_p5, %p1021_p3 }
  0x1b   : > { %1029 = shalt.err (!%p1026_p7)
}
  0x1c   : > { %s1030_s18 = scalar_lea.vmem %s1267_s7, 256  ;;  %p1038_p2 = scmp.lt.s32.totalorder %s1267_s7, %s1267_s7 }
  0x1d   : > { %p1031_p9 = scmp.ne.s32.totalorder %s1267_s7, %s1030_s18  ;;  %p1039_p12 = scmp.lt.s32.totalorder %s1030_s18, %s1030_s18 }
  0x1f   : > { %p1033_p10 = pnand %p1031_p9, %p1019_p13  ;;  %p1040_p0 = por %p1039_p12, %p1038_p2 }
  0x21   : > { %p1034_p1 = pneg %p1033_p10 }
  0x23   : > { %p1041_p6 = pnand %p1040_p0, %p1034_p1 }
  0x25   : > { %1044 = shalt.err (!%p1041_p6)
}
  0x26   : > { %s1177_s19 = smov 64   ;;  %s1178_s20 = smov 4  }
  0x27   : > { %944 = dma.hbm_to_vmem [thread:$0]  (!%p1274_p11), %s1514_s2, 256, %s1267_s7, [#allocation6], %s1177_s19, %s1177_s19, %s1178_s20  }
  0x28   : > { %s1045_s12 = scalar_lea.hbm %s1516_s4, 256 }
  0x29   : > { %p1046_p2 = scmp.ne.s32.totalorder %s1516_s4, %s1045_s12  ;;  %p1052_p10 = scmp.lt.u32.totalorder %s1045_s12, %s1516_s4 }
  0x2b   : > { %p1048_p1 = pnand %p1046_p2, %p1019_p13 }
  0x2d   : > { %p1049_p6 = pneg %p1048_p1 }
  0x2f   : > { %p1054_p3 = pnand %p1052_p10, %p1049_p6 }
  0x31   : > { %1057 = shalt.err (!%p1054_p3)
}
  0x32   : > { %s1058_s7 = scalar_lea.vmem %s1278_s10, 256  ;;  %p1066_p12 = scmp.lt.s32.totalorder %s1278_s10, %s1278_s10 }
  0x33   : > { %p1059_p5 = scmp.ne.s32.totalorder %s1278_s10, %s1058_s7  ;;  %p1067_p0 = scmp.lt.s32.totalorder %s1058_s7, %s1058_s7 }
  0x35   : > { %p1061_p7 = pnand %p1059_p5, %p1019_p13  ;;  %p1068_p2 = por %p1067_p0, %p1066_p12 }
  0x37   : > { %p1062_p9 = pneg %p1061_p7 }
  0x39   : > { %p1069_p1 = pnand %p1068_p2, %p1062_p9 }
  0x3b   : > { %1072 = shalt.err (!%p1069_p1)
}
  0x3c   : > { %947 = dma.hbm_to_vmem [thread:$0]  (!%p1274_p11), %s1516_s4, 256, %s1278_s10, [#allocation6], %s1177_s19, %s1177_s19, %s1178_s20  }
  0x3d   : > { %s1333_s26 = sadd.s32 1, %s1173_s24   ;;  %s30_s8 = sadd.s32 1, %s1169_s23 }
  0x3e   : > { %s27_s30 = ssub.s32 %s1173_s24, %s1333_s26  ;;  %p37_p13 = scmp.ne.s32.totalorder %s1169_s23, %s1165_s22 }
  0x3f   : > { %p28_p6 = scmp.eq.s32.totalorder %s27_s30, 0  ;;  %p38_p10 = scmp.eq.s32.totalorder %s1173_s24, 0 }
  0x40   : > { %p1526_p3 = scmp.eq.s32.totalorder %s1244_s25, 1  ;;  %p958_p7 = scmp.lt.s32.totalorder %s1173_s24, 2 }
  0x41   : > { %s1349_s11 = scalar_select %p28_p6, %s1169_s23, %s30_s8  }
  0x42   : > { %p1343_p5 = por %p1526_p3, %p37_p13  ;;  %p39_p9 = por %p38_p10, %p37_p13 }
  0x43   : > { %s235_s12 = sand.u32 1, %s1169_s23   ;;  %s847_s10 = sshll.u32 %s1173_s24, 7 }
  0x44   : > { %s1527_s9 = scalar_select %p1343_p5, 1, 0 }
  0x45   : > { %s846_s13 = sshll.u32 %s235_s12, 3  ;;  %s1356_s14 = scalar_lea.hbm %s1512_s0, %s847_s10 }
  0x46   : > { %s239_s15 = scalar_lea.vmem [#allocation2], %s846_s13  ;;  %p1360_p11 = pnand %p958_p7, %p39_p9 }
  0x47   : > { %s246_s16 = sshll.u32 %s239_s15, 4  ;;  %s236_s17 = scalar_lea.sflag [#allocation3], %s235_s12  ;;  %s1358_s16 = int_to_ptr.vmem [resolvable:$true] %s246_s16 }
  0x48   : > { %s1073_s18 = scalar_lea.hbm %s1356_s14, 128  ;;  %p1075_p0 = pneg %p1360_p11 }
  0x49   : > { %p1074_p12 = scmp.ne.s32.totalorder %s1356_s14, %s1073_s18  ;;  %s1078_s13 = scalar_lea.hbm %s1512_s0, 256 }
  0x4a   : > { %p1079_p13 = scmp.lt.u32.totalorder %s1356_s14, %s1512_s0  ;;  %p1080_p6 = scmp.lt.u32.totalorder %s1078_s13, %s1073_s18 }
  0x4b   : > { %p1076_p2 = pnand %p1075_p0, %p1074_p12  ;;  %p1082_p3 = scmp.lt.u32.totalorder %s1073_s18, %s1356_s14 }
  0x4c   : > { %p1081_p10 = por %p1080_p6, %p1079_p13 }
  0x4d   : > { %p1077_p1 = pneg %p1076_p2 }
  0x4e   : > { %p1083_p7 = por %p1082_p3, %p1081_p10 }
  0x50   : > { %p1084_p9 = pnand %p1083_p7, %p1077_p1 }
  0x52   : > { %1087 = shalt.err (!%p1084_p9)
}
  0x53   : > { %s1088_s12 = scalar_lea.vmem %s1358_s16, 128  ;;  %s1179_s20 = smov [#allocation2]  }
  0x54   : > { %p1089_p12 = scmp.ne.s32.totalorder %s1358_s16, %s1088_s12  ;;  %s1093_s15 = sshll.u32 %s1179_s20, 4  ;;  %s1094_s15 = int_to_ptr.vmem [resolvable:$false] %s1093_s15 }
  0x55   : > { %s1095_s8 = scalar_lea.vmem %s1094_s15, 256  ;;  %p1096_p4 = scmp.lt.s32.totalorder %s1358_s16, %s1094_s15 }
  0x56   : > { %p1091_p2 = pnand %p1089_p12, %p1075_p0  ;;  %p1097_p13 = scmp.lt.s32.totalorder %s1095_s8, %s1088_s12 }
  0x58   : > { %p1092_p5 = pneg %p1091_p2  ;;  %p1098_p6 = por %p1097_p13, %p1096_p4 }
  0x5a   : > { %p1099_p10 = pnand %p1098_p6, %p1092_p5 }
  0x5c   : > { %1102 = shalt.err (!%p1099_p10)
}
  0x5d   : > { %951 = dma.hbm_to_vmem [thread:$0]  (!%p1360_p11), %s1356_s14, 128, %s1358_s16, %s236_s17  }
  0x5e   : > { %261 = sbr.rel (%p1263_p8) target bundleno = 1438 (0x59e), region = 44  ;;  %s1392_s18 = sand.u32 (!%p1263_p8), 1, %s1165_s22  }
  0x5f   : > { %s849_s30 = sshll.u32 (!%p1263_p8), %s1392_s18, 3  ;;  %s264_s13 = scalar_lea.sflag (!%p1263_p8), [#allocation3], %s1392_s18 }
  0x60   : > { %s267_s10 = scalar_lea.vmem (!%p1263_p8), [#allocation2], %s849_s30  ;;  %p1529_p4 = scmp.ne.s32.totalorder (!%p1263_p8), %s1522_s27, 0 }
  0x65   : > { %1148 = dma.done.wait (%p1529_p4), %s264_s13, 128  }
  0x66   : > { %1150 = vsyncadd (%p1529_p4), %s264_s13, 4294967168  ;;  %p1530_p5 = scmp.eq.s32.totalorder %s1244_s25, 0 }
  0x68   : > { %1152 = dma.done.wait (%p1530_p5), [#allocation6], 512   ;;  %p1531_p8 = pmov %p1530_p5 }
  0x69   : > { %v1180_v0 = vmov 0.0   ;;  %vm1181_vm0 = vmmov 0   ;;  %v1005_v1 = vld [vmem:[#allocation5] sm:$0xff]   ;;  %v1006_v2 = vld [vmem:[#allocation5 + $0x8] sm:$0xff]   ;;  %v311_v3 = vld [vmem:[%s267_s10] sm:$0xff]  ;;  %vm336_vm1 = vcmask 261120   ;;  %v436_v17 = vlaneseq }
  0x6a   : > { %1154 = vsyncadd (%p1531_p8), [#allocation6], 4294966784  ;;  %885 = vmatprep.subr.bf16.mxu0 %v1180_v0  ;;  %889 = vmatprep.mubr.msk.bf16.mxu0 %vm1181_vm0, %v1180_v0  ;;  %v312_v4 = vpack.c.bf16 %v311_v3, %v311_v3  ;;  %v853_v5 = vld [vmem:[%s1515_s3] ss:$0 sm:$0xff]  ;;  %s1182_s14 = smov 112   ;;  %s1183_s16 = smov 96  }
  0x6b   : > { %893 = vmatprep.subr.bf16.mxu1 %v1180_v0  ;;  %895 = vmatprep.mubr.msk.bf16.mxu1 %vm1181_vm0, %v1180_v0  ;;  %s1184_s7 = smov 80   ;;  %vm387_vm2 = vcmask 130048   ;;  %p307_p11 = scmp.lt.s32.totalorder %s1244_s25, 1  ;;  %v437_v19 = vshrl.u32 %v436_v17, 7  ;;  %vm442_vm4 = vcmask 64512   ;;  %vm460_vm5 = vcmask 1043456  }
  0x6c   : > { %886 = vmatpush3.bf16.msra.mxu0 %v1005_v1  ;;  %s1185_s15 = smov 64   ;;  %s1186_s8 = smov 48   ;;  %v1007_v59 = vld [vmem:[#allocation7] sm:$0xff]   ;;  %v1008_v60 = vld [vmem:[#allocation7 + $0x8] sm:$0xff]  }
  0x6d   : > { %887 = vmatprep.subr.bf16.mxu0 %v1180_v0  ;;  %s308_s17 = scalar_select %p307_p11, %s1244_s25, 1  ;;  %v438_v20 = vsub.s32 0, %v437_v19 }
  0x6e   : > { %s867_s27 = sshll.u32 %s1244_s25, 7  ;;  %s306_s29 = scalar_lea.vmem [#allocation8], %s849_s30 }
  0x6f   : > { %s309_s20 = scalar_lea.vmem %s1513_s1, %s308_s17  ;;  %s1467_s17 = scalar_lea.hbm %s1518_s6, %s867_s27 }
  0x70   : > { %888 = vmatpush3.bf16.msra.mxu0 %v1006_v2  ;;  %v380_v18 = vld [vmem:[%s309_s20] sm:$0x1]  ;;  %s730_s25 = scalar_lea.sflag [#allocation4], %s1392_s18  ;;  %p1532_p1 = scmp.ne.s32.totalorder %s1527_s9, 0 }
  0x71   : > { %899 = vmatprep.subr.bf16.mxu0 %v1180_v0  ;;  %vm381_vm3 = vcmp.eq.f32.partialorder %v380_v18, 0.0  ;;  %s1187_s19 = smov [#allocation8]  }
  0x72   : > { %v382_v21 = vsel %vm381_vm3, -1e+30, %v1180_v0  ;;  %s1107_s12 = sshll.u32 %s1187_s19, 4  ;;  %s1108_s12 = int_to_ptr.vmem [resolvable:$false] %s1107_s12 }
  0x73   : > { %890 = vmatmul.mubr.msk.bf16.vlgmr.msra.gmra.mrb[0].mxu0 %vm336_vm1, %v312_v4  ;;  %v439_v22 = vrot.slane %v382_v21, %v438_v20  ;;  %s1109_s20 = scalar_lea.vmem %s1108_s12, 256 }
  0x74   : > { %901 = vmatprep.mubr.msk.bf16.mxu0 %vm1181_vm0, %v1180_v0 }
 0x146   : > { %v374_v6 = vpop.f32.mrb[0].mxu0 }
 0x147   : > { %v375_v7 = vadd.f32 %v853_v5, %v374_v6  ;;  %v891_v8 = vpop.f32.mrb[1].mxu0 }
 0x148   : > { %v377_v9 = vpop.f32.mrb[2].mxu0 }
 0x149   : > { %v1420_v10 = vpack.c.bf16 %v375_v7, %v375_v7  ;;  %v892_v11 = vpop.f32.mrb[3].mxu0 }
 0x14b   : > { %507 = vrot.lane.b32.xlu1 %v1420_v10, %s1182_s14  ;;  %385 = vrot.lane.b32.xlu0 %v1420_v10, %s1183_s16  ;;  %s743_s14 = sshll.u32 %s306_s29, 4  ;;  %s1469_s14 = int_to_ptr.vmem [resolvable:$true] %s743_s14 }
 0x14c   : > { %s1103_s30 = scalar_lea.vmem %s1469_s14, 128  ;;  %p1110_p9 = scmp.lt.s32.totalorder %s1469_s14, %s1108_s12 }
 0x14d   : > { %p1104_p0 = scmp.ne.s32.totalorder %s1469_s14, %s1103_s30  ;;  %p1111_p12 = scmp.lt.s32.totalorder %s1109_s20, %s1103_s30 }
 0x14f   : > { %509 = vrot.lane.b32.xlu0 %v1420_v10, %s1184_s7  ;;  %p1105_p3 = pnand %p1104_p0, %p1532_p1  ;;  %p1112_p2 = por %p1111_p12, %p1110_p9 }
 0x151   : > { %p1106_p7 = pneg %p1105_p3 }
 0x153   : > { %p1113_p13 = pnand %p1112_p2, %p1106_p7 }
 0x1bd   : > { %v386_v12 = vpop.permute.xlu0 %385  ;;  %v508_v16 = vpop.permute.xlu1 %507 }
 0x1be   : > { %v392_v13 = vsel %vm387_vm2, %v386_v12, 0  ;;  %v865_v12 = vld [vmem:[%s1517_s5] ss:$0 sm:$0xff] }
 0x1bf   : > { %894 = vmatpush3.bf16.xpose.msra.mxu1 %v392_v13 }
 0x1c0   : > { %905 = vmatprep.subr.bf16.mxu1 %v1180_v0 }
 0x1c1   : > { %v510_v14 = vpop.permute.xlu0 %509 }
 0x1c2   : > { %v515_v15 = vsel %vm387_vm2, %v510_v14, 0 }
 0x1c6   : > { %896 = vmatmul.mubr.msk.bf16.vlgmr.msra.gmra.mrb[0].mxu1 %vm387_vm2, %v1420_v10 }
 0x1c7   : > { %906 = vmatpush3.bf16.xpose.msra.mxu1 %v515_v15  ;;  %907 = vmatprep.mubr.msk.bf16.mxu1 %vm1181_vm0, %v1180_v0 }
 0x1c8   : > { %917 = vmatprep.subr.bf16.mxu1 %v1180_v0 }
 0x1ce   : > { %908 = vmatmul.mubr.msk.bf16.vlgmr.msra.gmra.mrb[4].mxu1 %vm387_vm2, %v508_v16 }
 0x1cf   : > { %919 = vmatprep.mubr.msk.bf16.mxu1 %vm1181_vm0, %v1180_v0  ;;  %918 = vmatpush3.bf16.msra.mxu1 %v1008_v60 }
 0x299   : > { %v428_v23 = vpop.f32.mrb[0].mxu1 }
 0x29a   : > { %v434_v24 = vmul.f32 0.25, %v428_v23  ;;  %v897_v25 = vpop.f32.mrb[1].mxu1 }
 0x29b   : > { %v431_v26 = vpop.f32.mrb[2].mxu1 }
 0x29c   : > { %v898_v27 = vpop.f32.mrb[3].mxu1  ;;  %v441_v28 = vadd.f32 %v439_v22, %v434_v24 }
 0x29e   : > { %v443_v29 = vsel %vm442_vm4, %v441_v28, -inf }
 0x29f   : > { %444 = vmax.xlane.f32.xlu1 %v443_v29 }
 0x2a1   : > { %v551_v30 = vpop.f32.mrb[4].mxu1 }
 0x2a2   : > { %v557_v31 = vmul.f32 0.25, %v551_v30  ;;  %v909_v32 = vpop.f32.mrb[5].mxu1 }
 0x2a3   : > { %v554_v33 = vpop.f32.mrb[6].mxu1 }
 0x2a4   : > { %v910_v34 = vpop.f32.mrb[7].mxu1  ;;  %v558_v35 = vadd.f32 %v557_v31, %v439_v22 }
 0x2a6   : > { %v559_v36 = vsel %vm442_vm4, %v558_v35, -inf }
 0x2a7   : > { %560 = vmax.xlane.f32.xlu0 %v559_v36 }
 0x32c   : > { %v445_v37 = vpop.xlane.xlu1 %444 }
 0x32d   : > { %v446_v38 = vsub.f32 %v441_v28, %v445_v37 }
 0x32f   : > { %v447_v39 = vmul.f32 1.442695, %v446_v38 }
 0x331   : > { %1009 = vpow2.f32 %v447_v39 }
 0x334   : > { %v561_v40 = vpop.xlane.xlu0 %560 }
 0x335   : > { %v562_v41 = vsub.f32 %v558_v35, %v561_v40 }
 0x337   : > { %v563_v42 = vmul.f32 1.442695, %v562_v41 }
 0x339   : > { %1011 = vpow2.f32 %v563_v42 }
 0x33b   : > { %v1010_v43 = vpop.eup %1009 }
 0x33c   : > { %v449_v44 = vsel %vm442_vm4, %v1010_v43, 0.0 }
 0x33d   : > { %450 = vadd.xlane.f32.xlu0 %v449_v44 }
 0x343   : > { %v1012_v45 = vpop.eup %1011 }
 0x344   : > { %v565_v46 = vsel %vm442_vm4, %v1012_v45, 0.0 }
 0x345   : > { %566 = vadd.xlane.f32.xlu1 %v565_v46 }
 0x353   : > { %455 = vrot.lane.b32.xlu0 %v1420_v10, %s1185_s15 }
 0x356   : > { %571 = vrot.lane.b32.xlu1 %v1420_v10, %s1186_s8 }
 0x3ca   : > { %v451_v47 = vpop.xlane.xlu0 %450 }
 0x3cb   : > { %1013 = vrcp.f32 %v451_v47 }
 0x3ce   : > { %v456_v48 = vpop.permute.xlu0 %455 }
 0x3cf   : > { %v462_v49 = vsel %vm460_vm5, %v456_v48, 0 }
 0x3d0   : > { %900 = vmatpush3.bf16.msra.mxu0 %v462_v49 }
 0x3d1   : > { %911 = vmatprep.subr.bf16.mxu0 %v1180_v0 }
 0x3d2   : > { %v567_v50 = vpop.xlane.xlu1 %566 }
 0x3d3   : > { %1015 = vrcp.f32 %v567_v50 }
 0x3d5   : > { %v1014_v51 = vpop.eup %1013 }
 0x3d6   : > { %v453_v52 = vmul.f32 %v1014_v51, %v1010_v43  ;;  %v572_v53 = vpop.permute.xlu1 %571 }
 0x3d7   : > { %v577_v55 = vsel %vm460_vm5, %v572_v53, 0 }
 0x3d8   : > { %v454_v54 = vpack.c.bf16 %v453_v52, %v453_v52 }
 0x3da   : > { %902 = vmatmul.mubr.msk.bf16.vlgmr.msra.gmra.mrb[4].mxu0 %vm442_vm4, %v454_v54 }
 0x3db   : > { %912 = vmatpush3.bf16.msra.mxu0 %v577_v55  ;;  %913 = vmatprep.mubr.msk.bf16.mxu0 %vm1181_vm0, %v1180_v0 }
 0x3dc   : > { %923 = vmatprep.subr.bf16.mxu0 %v1180_v0 }
 0x3dd   : > { %v1016_v56 = vpop.eup %1015 }
 0x3de   : > { %v569_v57 = vmul.f32 %v1016_v56, %v1012_v45 }
 0x3e0   : > { %v570_v58 = vpack.c.bf16 %v569_v57, %v569_v57 }
 0x3e2   : > { %914 = vmatmul.mubr.msk.bf16.vlgmr.msra.gmra.mrb[8].mxu0 %vm442_vm4, %v570_v58 }
 0x3e3   : > { %925 = vmatprep.mubr.msk.bf16.mxu0 %vm1181_vm0, %v1180_v0  ;;  %924 = vmatpush3.bf16.msra.mxu0 %v1007_v59 }
 0x4ad   : > { %v498_v61 = vpop.f32.mrb[4].mxu0 }
 0x4ae   : > { %v504_v62 = vpack.c.bf16 %v498_v61, %v498_v61  ;;  %v903_v63 = vpop.f32.mrb[5].mxu0 }
 0x4af   : > { %v501_v1 = vpop.f32.mrb[6].mxu0 }
 0x4b0   : > { %v904_v2 = vpop.f32.mrb[7].mxu0  ;;  %926 = vmatmul.mubr.msk.bf16.vlgmr.msra.gmra.mrb[12].mxu0 %vm387_vm2, %v504_v62 }
 0x4b5   : > { %v613_v3 = vpop.f32.mrb[8].mxu0 }
 0x4b6   : > { %v619_v4 = vpack.c.bf16 %v613_v3, %v613_v3  ;;  %v915_v5 = vpop.f32.mrb[9].mxu0 }
 0x4b7   : > { %v616_v6 = vpop.f32.mrb[10].mxu0 }
 0x4b8   : > { %v916_v7 = vpop.f32.mrb[11].mxu0  ;;  %920 = vmatmul.mubr.msk.bf16.vlgmr.msra.gmra.mrb[8].mxu1 %vm387_vm2, %v619_v4 }
 0x583   : > { %v714_v0 = vpop.f32.mrb[12].mxu0 }
 0x584   : > { %v927_v8 = vpop.f32.mrb[13].mxu0 }
 0x585   : > { %v717_v9 = vpop.f32.mrb[14].mxu0 }
 0x586   : > { %v928_v10 = vpop.f32.mrb[15].mxu0 }
 0x58b   : > { %v665_v11 = vpop.f32.mrb[8].mxu1 }
 0x58c   : > { %v715_v13 = vadd.f32 %v714_v0, %v665_v11  ;;  %v921_v14 = vpop.f32.mrb[9].mxu1 }
 0x58d   : > { %v668_v15 = vpop.f32.mrb[10].mxu1 }
 0x58e   : > { %v727_v16 = vadd.f32 %v865_v12, %v715_v13  ;;  %v922_v17 = vpop.f32.mrb[11].mxu1 }
 0x590   : > { %728 = vst.msk [vmem:[%s306_s29] sm:$0xff] %vm336_vm1, %v727_v16 }
 0x591   : > { %1116 = shalt.err (!%p1113_p13)
}
 0x592   : > { %s1117_s18 = scalar_lea.hbm %s1467_s17, 128  ;;  %s1121_s13 = scalar_lea.hbm %s1518_s6, 256 }
 0x593   : > { %p1118_p6 = scmp.ne.s32.totalorder %s1467_s17, %s1117_s18  ;;  %p1122_p5 = scmp.lt.u32.totalorder %s1467_s17, %s1518_s6 }
 0x594   : > { %p1123_p8 = scmp.lt.u32.totalorder %s1121_s13, %s1117_s18  ;;  %p1125_p0 = scmp.lt.u32.totalorder %s1117_s18, %s1467_s17 }
 0x595   : > { %p1119_p10 = pnand %p1118_p6, %p1532_p1 }
 0x596   : > { %p1124_p11 = por %p1123_p8, %p1122_p5 }
 0x597   : > { %p1120_p4 = pneg %p1119_p10 }
 0x598   : > { %p1126_p3 = por %p1125_p0, %p1124_p11 }
 0x59a   : > { %p1127_p7 = pnand %p1126_p3, %p1120_p4 }
 0x59c   : > { %1130 = shalt.err (!%p1127_p7)
}
 0x59d   : > { %939 = dma.vmem_to_hbm [thread:$0]  (%p1532_p1), %s1469_s14, 128, %s1467_s17, %s730_s25  }
 0x59e PF: > { %s755_s29 = sand.u32 1, %s1161_s21   ;;  %p1533_p9 = scmp.ne.s32.totalorder %s1523_s28, 0 }
 0x59f   : > { %p1534_p12 = scmp.ge.s32.totalorder %s1173_s24, 2  ;;  %s756_s16 = scalar_lea.sflag [#allocation4], %s755_s29 }
 0x5a1   : > { %p953_p2 = pnand %p1534_p12, %p1533_p9 }
 0x5a3   : > { %1156 = dma.done.wait (!%p953_p2), %s756_s16, 128  }
 0x5a4   : > { %1158 = vsyncadd (!%p953_p2), %s756_s16, 4294967168  ;;  %p20_p13 = scmp.ge.s32.totalorder %s1333_s26, 4   ;;  %s1535_s21 = smov %s1165_s22 }
 0x5a5   : > { %s1536_s22 = smov %s1169_s23  ;;  %s1537_s23 = smov %s1349_s11 }
 0x5a6   : > { %s1538_s24 = smov %s1333_s26  ;;  %22 = sbr.rel (!%p20_p13) target bundleno = 6 (0x6), region = 100 }
 0x5ad   :  { %761 = vsyncpa [#allocation3], 1 }
 0x5ae   :  { %763 = vsyncpa [#allocation3 + $0x1], 1 }
 0x5af   :  { %764 = vsyncpa [#allocation6], 1 }
 0x5b0   :  { %765 = vsyncpa [#allocation4], 1 }
 0x5b1   :  { %767 = vsyncpa [#allocation4 + $0x1], 1 }

</bundles_post_ra>
